<compile_context>
chip_gen: v7x
topology: tpu7x:2x2x1
jax: 0.10.0
libtpu: 0.0.40
codegen_flags: <defaults>
</compile_context>

<pallas_src>
import jax
import jax.numpy as jnp
from jax import lax
from jax.experimental import pallas as pl
from jax.experimental.pallas import tpu as pltpu

B = 2          # batch
L = 100        # sequence length (=> 64 * 47 = 3008 flattened features)
C1 = 32        # conv1 out channels
C2 = 64        # conv2 out channels
NUM_CLASS = 2

L1 = L - 2              # 98  after conv1    (k=3, s=1)
P1 = L1 - 1             # 97  after maxpool1 (k=2, s=1)
L2 = P1 - 2             # 95  after conv2    (k=3, s=1)
P2 = (L2 - 2) // 2 + 1  # 47  after maxpool2 (k=2, s=2)
FLAT = C2 * P2          # 3008 (matches nn.Linear(3008, 2))


def classifier_kernel(x_ref, w1_ref, b1_ref, w2_ref, b2_ref, wfc_ref, bfc_ref,
                      out_ref, h2_ref):
    # ---- conv1: in=1, out=32, k=3 -> (L1, C1); x is (L, 1) so taps are sublane slices ----
    x = x_ref[0]                                      # (L, 1) f32
    w1 = w1_ref[...]                                  # (3, C1): w1[k, o] = W1_pt[o, 0, k]
    h1 = (x[0:L1, :] * w1[0:1, :]
          + x[1:L1 + 1, :] * w1[1:2, :]
          + x[2:L1 + 2, :] * w1[2:3, :])              # (L1, C1)
    h1 = jnp.maximum(h1 + b1_ref[...], 0.0)           # relu1

    # ---- maxpool1: k=2, s=1 -> (P1, C1) ----
    p1 = jnp.maximum(h1[0:P1, :], h1[1:P1 + 1, :])

    # ---- conv2: single fused K=3*C1=96 MXU matmul on the lane-concatenated im2col window ----
    p1w = jnp.concatenate([p1[0:L2, :], p1[1:L2 + 1, :], p1[2:L2 + 2, :]],
                          axis=1)                     # (L2, 3*C1), column index k*C1 + c
    acc = jnp.dot(p1w.astype(jnp.bfloat16), w2_ref[...],   # w2 passed as bf16 (96, 64)
                  preferred_element_type=jnp.float32)       # (L2, C2), f32 accumulate
    h2_ref[...] = jnp.maximum(acc + b2_ref[...], 0.0)       # relu2, staged in VMEM scratch

    # ---- maxpool2: k=2, s=2 via stride-2 sublane loads from the scratch ref ----
    p2 = jnp.maximum(h2_ref[pl.ds(0, P2, stride=2), :],
                     h2_ref[pl.ds(1, P2, stride=2), :])      # (P2, C2)

    # ---- dropout(p=0.7): identity (eval-mode semantics) ----
    # TODO(synk): training-mode dropout (pltpu.prng_* Bernoulli mask + 1/(1-p) scale) not implemented.

    # ---- fc: per-class VPU multiply + reduce, keeping p2 in (P2, C2) layout (no 3008-wide flatten) ----
    cols = [jnp.sum(p2 * wfc_ref[n], keepdims=True) for n in range(NUM_CLASS)]   # each (1, 1)
    logits = jnp.concatenate(cols, axis=1) + bfc_ref[...]                         # (1, NUM_CLASS)

    # ---- softmax over classes ----
    m = jnp.max(logits, axis=1, keepdims=True)
    e = jnp.exp(logits - m)
    out_ref[0] = e * pl.reciprocal(jnp.sum(e, axis=1, keepdims=True), approx=True)


def classifier_forward(x, w1_k, b1_k, w2_k, b2_k, wfc_k, bfc_k):
    bsz = x.shape[0]
    x3 = x.astype(jnp.float32)[:, :, None]            # (B, L, 1): length on sublanes
    out = pl.pallas_call(
        classifier_kernel,
        out_shape=jax.ShapeDtypeStruct((bsz, 1, NUM_CLASS), jnp.float32),
        grid=(bsz,),
        in_specs=[
            pl.BlockSpec((1, L, 1), lambda b: (b, 0, 0)),            # x row
            pl.BlockSpec((3, C1), lambda b: (0, 0)),                 # conv1 weight
            pl.BlockSpec((1, C1), lambda b: (0, 0)),                 # conv1 bias
            pl.BlockSpec((3 * C1, C2), lambda b: (0, 0)),            # conv2 weight (bf16)
            pl.BlockSpec((1, C2), lambda b: (0, 0)),                 # conv2 bias
            pl.BlockSpec((NUM_CLASS, P2, C2), lambda b: (0, 0, 0)),  # fc weight
            pl.BlockSpec((1, NUM_CLASS), lambda b: (0, 0)),          # fc bias
        ],
        out_specs=pl.BlockSpec((1, 1, NUM_CLASS), lambda b: (b, 0, 0)),
        scratch_shapes=[pltpu.VMEM((L2, C2), jnp.float32)],
        compiler_params=pltpu.CompilerParams(dimension_semantics=("parallel",)),
    )(x3, w1_k, b1_k, w2_k, b2_k, wfc_k, bfc_k)
    return out.reshape(bsz, NUM_CLASS)


def ref_forward(x, W1, b1, W2, b2, Wfc, bfc):
    """Pure-JAX reference with exact PyTorch NCL semantics (for validation)."""
    dn = ('NCH', 'OIH', 'NCH')
    hp = jax.lax.Precision.HIGHEST
    xr = x[:, None, :].astype(jnp.float32)                                   # (B,1,L)
    h1 = lax.conv_general_dilated(xr, W1, (1,), 'VALID', dimension_numbers=dn,
                                  precision=hp) + b1[None, :, None]
    h1 = jnp.maximum(h1, 0.0)
    p1 = jnp.maximum(h1[:, :, 0:P1], h1[:, :, 1:P1 + 1])
    h2 = lax.conv_general_dilated(p1, W2, (1,), 'VALID', dimension_numbers=dn,
                                  precision=hp) + b2[None, :, None]
    h2 = jnp.maximum(h2, 0.0)
    p2 = jnp.maximum(h2[:, :, 0:2 * P2:2], h2[:, :, 1:2 * P2:2])             # (B, 64, 47)
    flat = p2.reshape(x.shape[0], -1)                                        # channel-major flatten
    logits = jnp.dot(flat, Wfc.T, precision=hp) + bfc
    return jax.nn.softmax(logits, axis=1)


if __name__ == "__main__":
    key = jax.random.PRNGKey(0)
    kx, k1, k2, k3, k4, k5, k6 = jax.random.split(key, 7)

    # deterministic synthetic parameters (PyTorch layouts)
    W1 = (jax.random.normal(k1, (C1, 1, 3)) * 0.2).astype(jnp.float32)          # conv1.weight
    b1 = (jax.random.normal(k2, (C1,)) * 0.1).astype(jnp.float32)               # conv1.bias
    W2 = (jax.random.normal(k3, (C2, C1, 3)) * 0.05).astype(jnp.float32)        # conv2.weight
    b2 = (jax.random.normal(k4, (C2,)) * 0.1).astype(jnp.float32)               # conv2.bias
    Wfc = (jax.random.normal(k5, (NUM_CLASS, FLAT)) * 0.02).astype(jnp.float32) # fc.weight
    bfc = (jax.random.normal(k6, (NUM_CLASS,)) * 0.1).astype(jnp.float32)       # fc.bias

    # re-order weights once into kernel (channels-last) layouts
    w1_k = jnp.transpose(W1[:, 0, :], (1, 0))                                     # (3, 32)
    b1_k = b1.reshape(1, C1)
    w2_k = jnp.transpose(W2, (2, 1, 0)).reshape(3 * C1, C2).astype(jnp.bfloat16)  # (96, 64), idx k*C1+c
    b2_k = b2.reshape(1, C2)
    wfc_k = jnp.transpose(Wfc.reshape(NUM_CLASS, C2, P2), (0, 2, 1))              # (2, 47, 64): [n, t, c]
    bfc_k = bfc.reshape(1, NUM_CLASS)

    x = jax.random.normal(kx, (B, L), dtype=jnp.float32)

    out = jax.block_until_ready(classifier_forward(x, w1_k, b1_k, w2_k, b2_k, wfc_k, bfc_k))
    ref = jax.block_until_ready(ref_forward(x, W1, b1, W2, b2, Wfc, bfc))

    assert out.shape == (B, NUM_CLASS)
    assert jnp.allclose(out, ref, rtol=2e-3, atol=2e-3), (out, ref)

    print("KERNEL_OK")
</pallas_src>

<mosaic_0001>
module attributes {stable_mosaic.version = 11 : i64} {
  func.func @classifier_kernel(%arg0: i32, %arg1: memref<1x100x1xf32, #tpu.memory_space<vmem>>, %arg2: memref<3x32xf32, #tpu.memory_space<vmem>>, %arg3: memref<1x32xf32, #tpu.memory_space<vmem>>, %arg4: memref<96x64xbf16, #tpu.memory_space<vmem>>, %arg5: memref<1x64xf32, #tpu.memory_space<vmem>>, %arg6: memref<2x47x64xf32, #tpu.memory_space<vmem>>, %arg7: memref<1x2xf32, #tpu.memory_space<vmem>>, %arg8: memref<1x1x2xf32, #tpu.memory_space<vmem>>, %arg9: memref<95x64xf32, #tpu.memory_space<vmem>>) attributes {dimension_semantics = [#tpu.dimension_semantics<parallel>], iteration_bounds = array<i64: 2>, scalar_prefetch = 0 : i64, scratch_operands = 1 : i64, tpu.core_type = #tpu.core_type<tc>, window_params = [{transform_indices = @transform_0, window_bounds = array<i64: 1, 100, 1>}, {pipeline_mode = #tpu.pipeline_mode<synchronous>, transform_indices = @transform_1, window_bounds = array<i64: 3, 32>}, {pipeline_mode = #tpu.pipeline_mode<synchronous>, transform_indices = @transform_2, window_bounds = array<i64: 1, 32>}, {pipeline_mode = #tpu.pipeline_mode<synchronous>, transform_indices = @transform_3, window_bounds = array<i64: 96, 64>}, {pipeline_mode = #tpu.pipeline_mode<synchronous>, transform_indices = @transform_4, window_bounds = array<i64: 1, 64>}, {pipeline_mode = #tpu.pipeline_mode<synchronous>, transform_indices = @transform_5, window_bounds = array<i64: 2, 47, 64>}, {pipeline_mode = #tpu.pipeline_mode<synchronous>, transform_indices = @transform_6, window_bounds = array<i64: 1, 2>}, {transform_indices = @transform_7, window_bounds = array<i64: 1, 1, 2>}]} {
    %c0 = arith.constant 0 : index
    %c0_0 = arith.constant 0 : index
    %c0_1 = arith.constant 0 : index
    %0 = vector.load %arg1[%c0, %c0_0, %c0_1] : memref<1x100x1xf32, #tpu.memory_space<vmem>>, vector<1x100x1xf32>
    %1 = vector.shape_cast %0 : vector<1x100x1xf32> to vector<100x1xf32>
    %c0_2 = arith.constant 0 : index
    %c0_3 = arith.constant 0 : index
    %2 = vector.load %arg2[%c0_2, %c0_3] : memref<3x32xf32, #tpu.memory_space<vmem>>, vector<3x32xf32>
    %3 = vector.extract_strided_slice %1 {offsets = [0, 0], sizes = [98, 1], strides = [1, 1]} : vector<100x1xf32> to vector<98x1xf32>
    %4 = vector.extract_strided_slice %2 {offsets = [0, 0], sizes = [1, 32], strides = [1, 1]} : vector<3x32xf32> to vector<1x32xf32>
    %5 = vector.broadcast %3 : vector<98x1xf32> to vector<98x32xf32>
    %6 = vector.broadcast %4 : vector<1x32xf32> to vector<98x32xf32>
    %7 = arith.mulf %5, %6 : vector<98x32xf32>
    %8 = vector.extract_strided_slice %1 {offsets = [1, 0], sizes = [98, 1], strides = [1, 1]} : vector<100x1xf32> to vector<98x1xf32>
    %9 = vector.extract_strided_slice %2 {offsets = [1, 0], sizes = [1, 32], strides = [1, 1]} : vector<3x32xf32> to vector<1x32xf32>
    %10 = vector.broadcast %8 : vector<98x1xf32> to vector<98x32xf32>
    %11 = vector.broadcast %9 : vector<1x32xf32> to vector<98x32xf32>
    %12 = arith.mulf %10, %11 : vector<98x32xf32>
    %13 = arith.addf %7, %12 : vector<98x32xf32>
    %14 = vector.extract_strided_slice %1 {offsets = [2, 0], sizes = [98, 1], strides = [1, 1]} : vector<100x1xf32> to vector<98x1xf32>
    %15 = vector.extract_strided_slice %2 {offsets = [2, 0], sizes = [1, 32], strides = [1, 1]} : vector<3x32xf32> to vector<1x32xf32>
    %16 = vector.broadcast %14 : vector<98x1xf32> to vector<98x32xf32>
    %17 = vector.broadcast %15 : vector<1x32xf32> to vector<98x32xf32>
    %18 = arith.mulf %16, %17 : vector<98x32xf32>
    %19 = arith.addf %13, %18 : vector<98x32xf32>
    %c0_4 = arith.constant 0 : index
    %c0_5 = arith.constant 0 : index
    %20 = vector.load %arg3[%c0_4, %c0_5] : memref<1x32xf32, #tpu.memory_space<vmem>>, vector<1x32xf32>
    %21 = vector.broadcast %20 : vector<1x32xf32> to vector<98x32xf32>
    %22 = arith.addf %19, %21 : vector<98x32xf32>
    %cst = arith.constant 0.000000e+00 : f32
    %23 = vector.broadcast %cst : f32 to vector<98x32xf32>
    %24 = arith.maximumf %22, %23 : vector<98x32xf32>
    %25 = vector.extract_strided_slice %24 {offsets = [0, 0], sizes = [97, 32], strides = [1, 1]} : vector<98x32xf32> to vector<97x32xf32>
    %26 = vector.extract_strided_slice %24 {offsets = [1, 0], sizes = [97, 32], strides = [1, 1]} : vector<98x32xf32> to vector<97x32xf32>
    %27 = arith.maximumf %25, %26 : vector<97x32xf32>
    %28 = vector.extract_strided_slice %27 {offsets = [0, 0], sizes = [95, 32], strides = [1, 1]} : vector<97x32xf32> to vector<95x32xf32>
    %29 = vector.extract_strided_slice %27 {offsets = [1, 0], sizes = [95, 32], strides = [1, 1]} : vector<97x32xf32> to vector<95x32xf32>
    %30 = vector.extract_strided_slice %27 {offsets = [2, 0], sizes = [95, 32], strides = [1, 1]} : vector<97x32xf32> to vector<95x32xf32>
    %31 = tpu.concatenate %28, %29, %30 in 1 : vector<95x32xf32>, vector<95x32xf32>, vector<95x32xf32> -> vector<95x96xf32>
    %32 = arith.truncf %31 : vector<95x96xf32> to vector<95x96xbf16>
    %c0_6 = arith.constant 0 : index
    %c0_7 = arith.constant 0 : index
    %33 = vector.load %arg4[%c0_6, %c0_7] : memref<96x64xbf16, #tpu.memory_space<vmem>>, vector<96x64xbf16>
    %cst_8 = arith.constant dense<0.000000e+00> : vector<95x64xf32>
    %34 = tpu.matmul %32, %33, %cst_8 {dimension_numbers = #tpu.dot_dimension_numbers<[1], [0], [0], [1], [0, 0, 1, 1], [], []>} : vector<95x96xbf16>, vector<96x64xbf16>, vector<95x64xf32> -> vector<95x64xf32>
    %c0_9 = arith.constant 0 : index
    %c0_10 = arith.constant 0 : index
    %35 = vector.load %arg5[%c0_9, %c0_10] : memref<1x64xf32, #tpu.memory_space<vmem>>, vector<1x64xf32>
    %36 = vector.broadcast %35 : vector<1x64xf32> to vector<95x64xf32>
    %37 = arith.addf %34, %36 : vector<95x64xf32>
    %cst_11 = arith.constant 0.000000e+00 : f32
    %38 = vector.broadcast %cst_11 : f32 to vector<95x64xf32>
    %39 = arith.maximumf %37, %38 : vector<95x64xf32>
    %c0_12 = arith.constant 0 : index
    %c0_13 = arith.constant 0 : index
    %40 = vector.load %arg9[%c0_12, %c0_13] : memref<95x64xf32, #tpu.memory_space<vmem>>, vector<95x64xf32>
    tpu.vector_store %arg9[%c0_12, %c0_13], %39 {strides = array<i32>} : memref<95x64xf32, #tpu.memory_space<vmem>>, vector<95x64xf32>,
    %c0_14 = arith.constant 0 : index
    %c0_15 = arith.constant 0 : index
    %41 = tpu.strided_load %arg9[%c0_14, %c0_15] {strides = array<i32: 2, 1>} : memref<95x64xf32, #tpu.memory_space<vmem>>, vector<47x64xf32>
    %c1 = arith.constant 1 : index
    %c0_16 = arith.constant 0 : index
    %42 = tpu.strided_load %arg9[%c1, %c0_16] {strides = array<i32: 2, 1>} : memref<95x64xf32, #tpu.memory_space<vmem>>, vector<47x64xf32>
    %43 = arith.maximumf %41, %42 : vector<47x64xf32>
    %c0_17 = arith.constant 0 : index
    %c0_18 = arith.constant 0 : index
    %c0_19 = arith.constant 0 : index
    %44 = vector.load %arg6[%c0_17, %c0_18, %c0_19] : memref<2x47x64xf32, #tpu.memory_space<vmem>>, vector<1x47x64xf32>
    %45 = vector.shape_cast %44 : vector<1x47x64xf32> to vector<47x64xf32>
    %46 = arith.mulf %43, %45 : vector<47x64xf32>
    %47 = vector.shape_cast %46 : vector<47x64xf32> to vector<1x47x64xf32>
    %cst_20 = arith.constant dense<0.000000e+00> : vector<1xf32>
    %48 = vector.multi_reduction <add>, %47, %cst_20 [1, 2] : vector<1x47x64xf32> to vector<1xf32>
    %49 = vector.shape_cast %48 : vector<1xf32> to vector<1x1x1xf32>
    %50 = vector.extract %49[0, 0, 0] : f32 from vector<1x1x1xf32>
    %51 = vector.broadcast %50 : f32 to vector<1x1xf32>
    %c1_21 = arith.constant 1 : index
    %c0_22 = arith.constant 0 : index
    %c0_23 = arith.constant 0 : index
    %52 = vector.load %arg6[%c1_21, %c0_22, %c0_23] : memref<2x47x64xf32, #tpu.memory_space<vmem>>, vector<1x47x64xf32>
    %53 = vector.shape_cast %52 : vector<1x47x64xf32> to vector<47x64xf32>
    %54 = arith.mulf %43, %53 : vector<47x64xf32>
    %55 = vector.shape_cast %54 : vector<47x64xf32> to vector<1x47x64xf32>
    %cst_24 = arith.constant dense<0.000000e+00> : vector<1xf32>
    %56 = vector.multi_reduction <add>, %55, %cst_24 [1, 2] : vector<1x47x64xf32> to vector<1xf32>
    %57 = vector.shape_cast %56 : vector<1xf32> to vector<1x1x1xf32>
    %58 = vector.extract %57[0, 0, 0] : f32 from vector<1x1x1xf32>
    %59 = vector.broadcast %58 : f32 to vector<1x1xf32>
    %60 = tpu.concatenate %51, %59 in 1 : vector<1x1xf32>, vector<1x1xf32> -> vector<1x2xf32>
    %c0_25 = arith.constant 0 : index
    %c0_26 = arith.constant 0 : index
    %61 = vector.load %arg7[%c0_25, %c0_26] : memref<1x2xf32, #tpu.memory_space<vmem>>, vector<1x2xf32>
    %62 = arith.addf %60, %61 : vector<1x2xf32>
    %cst_27 = arith.constant dense<0xFF800000> : vector<1xf32>
    %63 = vector.multi_reduction <maximumf>, %62, %cst_27 [1] : vector<1x2xf32> to vector<1xf32>
    %64 = vector.shape_cast %63 : vector<1xf32> to vector<1x1xf32>
    %65 = vector.broadcast %64 : vector<1x1xf32> to vector<1x2xf32>
    %66 = arith.subf %62, %65 : vector<1x2xf32>
    %67 = math.exp %66 : vector<1x2xf32>
    %cst_28 = arith.constant dense<0.000000e+00> : vector<1xf32>
    %68 = vector.multi_reduction <add>, %67, %cst_28 [1] : vector<1x2xf32> to vector<1xf32>
    %69 = vector.shape_cast %68 : vector<1xf32> to vector<1x1xf32>
    %70 = tpu.reciprocal %69 {approx = true} : vector<1x1xf32> -> vector<1x1xf32>
    %71 = vector.broadcast %70 : vector<1x1xf32> to vector<1x2xf32>
    %72 = arith.mulf %67, %71 : vector<1x2xf32>
    %c0_29 = arith.constant 0 : index
    %c0_30 = arith.constant 0 : index
    %c0_31 = arith.constant 0 : index
    %73 = vector.load %arg8[%c0_29, %c0_30, %c0_31] : memref<1x1x2xf32, #tpu.memory_space<vmem>>, vector<1x1x2xf32>
    %74 = vector.shape_cast %73 : vector<1x1x2xf32> to vector<1x2xf32>
    %75 = vector.shape_cast %72 : vector<1x2xf32> to vector<1x1x2xf32>
    tpu.vector_store %arg8[%c0_29, %c0_30, %c0_31], %75 {strides = array<i32>} : memref<1x1x2xf32, #tpu.memory_space<vmem>>, vector<1x1x2xf32>,
    return
  }
  func.func @transform_0(%arg0: i32) -> (i32, i32, i32) {
    %c0_i32 = arith.constant 0 : i32
    %c0_i32_0 = arith.constant 0 : i32
    %c0_i32_1 = arith.constant 0 : i32
    return %arg0, %c0_i32, %c0_i32_0 : i32, i32, i32
  }
  func.func @transform_1(%arg0: i32) -> (i32, i32) {
    %c0_i32 = arith.constant 0 : i32
    %c0_i32_0 = arith.constant 0 : i32
    %c0_i32_1 = arith.constant 0 : i32
    return %c0_i32, %c0_i32_0 : i32, i32
  }
  func.func @transform_2(%arg0: i32) -> (i32, i32) {
    %c0_i32 = arith.constant 0 : i32
    %c0_i32_0 = arith.constant 0 : i32
    %c0_i32_1 = arith.constant 0 : i32
    return %c0_i32, %c0_i32_0 : i32, i32
  }
  func.func @transform_3(%arg0: i32) -> (i32, i32) {
    %c0_i32 = arith.constant 0 : i32
    %c0_i32_0 = arith.constant 0 : i32
    %c0_i32_1 = arith.constant 0 : i32
    return %c0_i32, %c0_i32_0 : i32, i32
  }
  func.func @transform_4(%arg0: i32) -> (i32, i32) {
    %c0_i32 = arith.constant 0 : i32
    %c0_i32_0 = arith.constant 0 : i32
    %c0_i32_1 = arith.constant 0 : i32
    return %c0_i32, %c0_i32_0 : i32, i32
  }
  func.func @transform_5(%arg0: i32) -> (i32, i32, i32) {
    %c0_i32 = arith.constant 0 : i32
    %c0_i32_0 = arith.constant 0 : i32
    %c0_i32_1 = arith.constant 0 : i32
    %c0_i32_2 = arith.constant 0 : i32
    return %c0_i32, %c0_i32_0, %c0_i32_1 : i32, i32, i32
  }
  func.func @transform_6(%arg0: i32) -> (i32, i32) {
    %c0_i32 = arith.constant 0 : i32
    %c0_i32_0 = arith.constant 0 : i32
    %c0_i32_1 = arith.constant 0 : i32
    return %c0_i32, %c0_i32_0 : i32, i32
  }
  func.func @transform_7(%arg0: i32) -> (i32, i32, i32) {
    %c0_i32 = arith.constant 0 : i32
    %c0_i32_0 = arith.constant 0 : i32
    %c0_i32_1 = arith.constant 0 : i32
    return %arg0, %c0_i32, %c0_i32_0 : i32, i32, i32
  }
}

</mosaic_0001>

<bundles_post_ra>
// kernel: tpu_custom_call.1
= control target key start
LH: loop header
LB: loop body
LE: loop exit
PB: predicated region body
PF: predicated region fallthrough
CT: control target
= control target key end

     0   :  { %12 = vsyncpa [#allocation4], 0  ;;  %s2017_s0 = inlined_call_operand.vmem [shape: f32[2,100,1], index: 0, kind: input, shape index: {}]   ;;  %s2018_s1 = inlined_call_operand.vmem [shape: f32[3,32], index: 1, kind: input, shape index: {}]   ;;  %s2019_s2 = inlined_call_operand.vmem [shape: f32[1,32], index: 2, kind: input, shape index: {}]   ;;  %s2020_s3 = inlined_call_operand.vmem [shape: bf16[96,64], index: 3, kind: input, shape index: {}]   ;;  %s2021_s4 = inlined_call_operand.vmem [shape: f32[1,64], index: 4, kind: input, shape index: {}]   ;;  %s2022_s5 = inlined_call_operand.vmem [shape: f32[2,47,64], index: 5, kind: input, shape index: {}]   ;;  %s2023_s6 = inlined_call_operand.vmem [shape: f32[1,2], index: 6, kind: input, shape index: {}]   ;;  %s2024_s7 = inlined_call_operand.hbm [shape: f32[2,1,2], index: 7, kind: output, shape index: {}]  }
   0x1   :  { %14 = vsyncpa [#allocation4 + $0x1], 0  ;;  %s1463_s24 = smov 0   ;;  %s1465_s25 = smov 0  }
   0x2   :  { %s1467_s26 = smov 0   ;;  %s1469_s27 = smov 0  }
   0x3 LB: > { %s1484_s28 = sadd.s32 4294967295, %s1417_s27   ;;  %s1160_s29 = sadd.s32 4294967294, %s1417_s27   ;;  %s1417_s27 = sphi %s1469_s27, %s2030_s27   ;;  %s1413_s26 = sphi %s1467_s26, %s2029_s26   ;;  %s1409_s25 = sphi %s1465_s25, %s2028_s25   ;;  %s1405_s24 = sphi %s1463_s24, %s2027_s24  }
   0x4   : > { %s1488_s30 = sadd.s32 1, %s1417_s27   ;;  %s179_s8 = sadd.s32 1, %s1413_s26 }
   0x5   : > { %s176_s9 = ssub.s32 %s1417_s27, %s1488_s30  ;;  %p189_p0 = scmp.ne.s32.totalorder %s1413_s26, %s1409_s25 }
   0x6   : > { %p177_p1 = scmp.eq.s32.totalorder %s176_s9, 0  ;;  %p190_p2 = scmp.eq.s32.totalorder %s1484_s28, 1 }
   0x7   : > { %p195_p3 = scmp.ne.s32.totalorder %s1409_s25, %s1405_s24  ;;  %p196_p4 = scmp.eq.s32.totalorder %s1160_s29, 1 }
   0x8   : > { %s1499_s10 = scalar_select %p177_p1, %s1413_s26, %s179_s8  }
   0x9   : > { %p1501_p5 = por %p190_p2, %p189_p0  ;;  %p1505_p6 = por %p196_p4, %p195_p3 }
   0xa   : > { %p1163_p7 = scmp.ge.s32.totalorder %s1417_s27, 1  ;;  %p240_p8 = scmp.lt.s32.totalorder %s1417_s27, 3 }
   0xc   : > { %p241_p9 = pnand %p1163_p7, %p240_p8 }
   0xd   : > { %p271_p10 = scmp.lt.s32.totalorder (!%p241_p9), %s1484_s28, 1  ;;  %v1419_v0 = vmov (!%p241_p9), 0   ;;  %v1345_v14 = vld [vmem:[%s2020_s3] sm:$0xff] (!%p241_p9)   ;;  %v1346_v15 = vld [vmem:[%s2020_s3 + $0x8] sm:$0xff] (!%p241_p9)   ;;  %v1347_v16 = vld [vmem:[%s2020_s3 + $0x10] sm:$0xff] (!%p241_p9)   ;;  %v356_v17 = vlaneseq (!%p241_p9)  ;;  %vm403_vm0 = vcmask (!%p241_p9), 1046528  }
   0xe   : > { %244 = sbr.rel (%p241_p9) target bundleno = 1122 (0x462), region = 48  ;;  %1284 = vset.pattern.permute.xlu1 (!%p241_p9), %v1419_v0  ;;  %1283 = vset.pattern.permute.xlu0 (!%p241_p9), %v1419_v0  ;;  %v290_v21 = vld [vmem:[%s2018_s1] sm:$0x7] (!%p241_p9)  ;;  %vm485_vm1 = vcmask (!%p241_p9), 1045504   ;;  %s1420_s20 = smov (!%p241_p9), 32   ;;  %vm767_vm2 = vcmask (!%p241_p9), 261120  }
   0xf   : > { %1224 = vmatprep.subr.bf16.mxu1 (!%p241_p9), %v1345_v14  ;;  %1200 = vmatprep.subr.bf16.mxu0 (!%p241_p9), %v1345_v14  ;;  %v357_v18 = vshrl.u32 (!%p241_p9), %v356_v17, 7  ;;  %v1563_v59 = vld [vmem:[%s2019_s2] ss:$0 sm:$0xff] (!%p241_p9)  ;;  %s1421_s21 = smov (!%p241_p9), 64   ;;  %vm780_vm3 = vcmask (!%p241_p9), 523264   ;;  %vm854_vm4 = vcmask (!%p241_p9), 785408  }
  0x10   : > { %1230 = vmatpush3.bf16.msra.mxu1 (!%p241_p9), %v1345_v14  ;;  %1201 = vmatpush3.bf16.msra.mxu0 (!%p241_p9), %v1345_v14  ;;  %vm977_vm5 = vcmask (!%p241_p9), 522240   ;;  %vm1075_vm6 = vcmask (!%p241_p9), 7168   ;;  %vm1079_vm7 = vcmask (!%p241_p9), 8192   ;;  %s269_s29 = sand.u32 (!%p241_p9), 1, %s1409_s25   ;;  %s1185_s8 = sshll.u32 (!%p241_p9), %s1484_s28, 4 }
  0x11   : > { %1225 = vmatprep.subr.bf16.mxu1 (!%p241_p9), %v1346_v15  ;;  %1202 = vmatprep.subr.bf16.mxu0 (!%p241_p9), %v1346_v15  ;;  %v375_v19 = vsub.s32 (!%p241_p9), 1, %v357_v18  ;;  %v457_v20 = vsub.s32 (!%p241_p9), 2, %v357_v18  ;;  %v358_v22 = vsub.s32 (!%p241_p9), 0, %v357_v18  ;;  %s270_s9 = scalar_lea.vmem (!%p241_p9), [#allocation3], %s269_s29  ;;  %s1974_s16 = scalar_lea.hbm (!%p241_p9), %s2024_s7, %s1185_s8 }
  0x13   : > { %v1528_v23 = vrot.slane (!%p241_p9), %v290_v21, %v375_v19  ;;  %v1530_v24 = vrot.slane (!%p241_p9), %v290_v21, %v457_v20  ;;  %v1534_v29 = vrot.slane (!%p241_p9), %v290_v21, %v358_v22 }
  0x14   : > { %1231 = vmatpush3.bf16.msra.mxu1 (!%p241_p9), %v1346_v15  ;;  %1203 = vmatpush3.bf16.msra.mxu0 (!%p241_p9), %v1346_v15 }
  0x15   : > { %s272_s13 = scalar_select %p271_p10, %s1484_s28, 1  ;;  %1226 = vmatprep.subr.bf16.mxu1 %v1347_v16  ;;  %1204 = vmatprep.subr.bf16.mxu0 %v1347_v16 }
  0x16   : > { %s1422_s28 = smov [#allocation3]  }
  0x17   : > { %s1236_s14 = smul.u32 104, %s272_s13  ;;  %s1105_s13 = sshll.u32 %s270_s9, 4  ;;  %s1976_s13 = int_to_ptr.vmem [resolvable:$true] %s1105_s13 }
  0x18   : > { %1232 = vmatpush3.bf16.msra.mxu1 %v1347_v16  ;;  %1205 = vmatpush3.bf16.msra.mxu0 %v1347_v16  ;;  %s1355_s18 = scalar_lea.vmem %s1976_s13, 16  ;;  %s1359_s19 = sshll.u32 %s1422_s28, 4  ;;  %s1360_s19 = int_to_ptr.vmem [resolvable:$false] %s1359_s19 }
  0x19   : > { %s275_s17 = scalar_lea.vmem %s2017_s0, %s1236_s14  ;;  %p1356_p11 = scmp.ne.s32.totalorder %s1976_s13, %s1355_s18 }
  0x1a   : > { %v283_v1 = vld [vmem:[%s275_s17 + $0x30] sm:$0xff]  ;;  %v281_v2 = vld [vmem:[%s275_s17 + $0x20] sm:$0xff]  ;;  %v284_v3 = vld [vmem:[%s275_s17 + $0x38] sm:$0xff]  ;;  %p1362_p0 = scmp.lt.s32.totalorder %s1976_s13, %s1360_s19 }
  0x1b   : > { %323 = vperm.xlu1 %1284, %v283_v1   ;;  %313 = vperm.xlu0 %1283, %v281_v2   ;;  %v282_v4 = vld [vmem:[%s275_s17 + $0x28] sm:$0xff]  ;;  %v285_v6 = vld [vmem:[%s275_s17 + $0x40] sm:$0xff]  ;;  %v287_v7 = vld [vmem:[%s275_s17 + $0x50] sm:$0xff]  ;;  %p1357_p12 = pnand %p1356_p11, %p1501_p5 }
  0x1c   : > { %v286_v5 = vld [vmem:[%s275_s17 + $0x48] sm:$0xff]  ;;  %v277_v8 = vld [vmem:[%s275_s17] sm:$0xff]  ;;  %v279_v10 = vld [vmem:[%s275_s17 + $0x10] sm:$0xff] }
  0x1d   : > { %v278_v9 = vld [vmem:[%s275_s17 + $0x8] sm:$0xff]  ;;  %v280_v11 = vld [vmem:[%s275_s17 + $0x18] sm:$0xff]  ;;  %v289_v13 = vld [vmem:[%s275_s17 + $0x60] sm:$0xf]  ;;  %p1358_p13 = pneg %p1357_p12 }
  0x1e   : > { %v288_v12 = vld [vmem:[%s275_s17 + $0x58] sm:$0xff]  ;;  %s1093_s17 = scalar_lea.sflag [#allocation4], %s269_s29 }
  0x1f   : > { %328 = vperm.xlu1 %1284, %v284_v3   ;;  %318 = vperm.xlu0 %1283, %v282_v4  }
  0x23   : > { %338 = vperm.xlu1 %1284, %v286_v5   ;;  %333 = vperm.xlu0 %1283, %v285_v6  }
  0x27   : > { %343 = vperm.xlu0 %1283, %v287_v7   ;;  %293 = vperm.xlu1 %1284, %v277_v8  }
  0x2b   : > { %298 = vperm.xlu0 %1283, %v278_v9   ;;  %303 = vperm.xlu1 %1284, %v279_v10  }
  0x2f   : > { %308 = vperm.xlu0 %1283, %v280_v11   ;;  %348 = vperm.xlu1 %1284, %v288_v12  }
  0x33   : > { %353 = vperm.xlu0 %1283, %v289_v13  }
  0x9a   : > { %v324_v25 = vpop.permute.xlu1 %323  ;;  %v314_v26 = vpop.permute.xlu0 %313 }
  0x9b   : > { %v383_v27 = vmul.f32 %v1528_v23, %v324_v25  ;;  %v465_v28 = vmul.f32 %v1530_v24, %v324_v25  ;;  %v1537_v30 = vmul.f32 %v1528_v23, %v314_v26  ;;  %v1540_v31 = vmul.f32 %v1530_v24, %v314_v26 }
  0x9c   : > { %v366_v38 = vmul.f32 %v1534_v29, %v324_v25  ;;  %v364_v41 = vmul.f32 %v1534_v29, %v314_v26 }
  0x9d   : > { %v415_v34 = vrot.slane %v383_v27, 1  ;;  %v497_v35 = vrot.slane %v465_v28, 2  ;;  %v411_v42 = vrot.slane %v1537_v30, 1  ;;  %v493_v45 = vrot.slane %v1540_v31, 2 }
  0x9e   : > { %v329_v32 = vpop.permute.xlu1 %328  ;;  %v319_v33 = vpop.permute.xlu0 %318 }
  0x9f   : > { %v384_v36 = vmul.f32 %v1528_v23, %v329_v32  ;;  %v466_v37 = vmul.f32 %v1530_v24, %v329_v32  ;;  %v382_v39 = vmul.f32 %v1528_v23, %v319_v33  ;;  %v464_v40 = vmul.f32 %v1530_v24, %v319_v33 }
  0xa0   : > { %v367_v46 = vmul.f32 %v1534_v29, %v329_v32  ;;  %v365_v53 = vmul.f32 %v1534_v29, %v319_v33 }
  0xa1   : > { %v417_v43 = vrot.slane %v384_v36, 1  ;;  %v499_v44 = vrot.slane %v466_v37, 2  ;;  %v413_v47 = vrot.slane %v382_v39, 1  ;;  %v495_v48 = vrot.slane %v464_v40, 2 }
  0xa2   : > { %v339_v49 = vpop.permute.xlu1 %338  ;;  %v334_v50 = vpop.permute.xlu0 %333 }
  0xa3   : > { %v418_v51 = vsel %vm403_vm0, %v415_v34, %v417_v43  ;;  %v500_v52 = vsel %vm485_vm1, %v497_v35, %v499_v44  ;;  %v386_v54 = vmul.f32 %v1528_v23, %v339_v49  ;;  %v414_v56 = vsel %vm403_vm0, %v411_v42, %v413_v47 }
  0xa4   : > { %v448_v55 = vadd.f32 %v418_v51, %v366_v38  ;;  %v416_v57 = vsel %vm403_vm0, %v413_v47, %v415_v34  ;;  %v369_v58 = vmul.f32 %v1534_v29, %v339_v49  ;;  %v446_v60 = vadd.f32 %v414_v56, %v364_v41 }
  0xa5   : > { %v447_v61 = vadd.f32 %v416_v57, %v365_v53  ;;  %v496_v62 = vsel %vm485_vm1, %v493_v45, %v495_v48  ;;  %v498_v63 = vsel %vm485_vm1, %v495_v48, %v497_v35  ;;  %v421_v1 = vrot.slane %v386_v54, 1 }
  0xa6   : > { %v530_v0 = vadd.f32 %v500_v52, %v448_v55  ;;  %v468_v2 = vmul.f32 %v1530_v24, %v339_v49  ;;  %v385_v3 = vmul.f32 %v1528_v23, %v334_v50  ;;  %v344_v4 = vpop.permute.xlu0 %343  ;;  %v528_v5 = vadd.f32 %v496_v62, %v446_v60  ;;  %v294_v17 = vpop.permute.xlu1 %293 }
  0xa7   : > { %v529_v6 = vadd.f32 %v498_v63, %v447_v61  ;;  %v368_v7 = vmul.f32 %v1534_v29, %v334_v50  ;;  %v467_v8 = vmul.f32 %v1530_v24, %v334_v50  ;;  %v1577_v12 = vmul.f32 %v1528_v23, %v344_v4 }
  0xa8   : > { %v1574_v9 = vadd.f32 %v1563_v59, %v530_v0  ;;  %v503_v10 = vrot.slane %v468_v2, 2  ;;  %v419_v11 = vrot.slane %v385_v3, 1  ;;  %v1580_v13 = vadd.f32 %v1563_v59, %v528_v5 }
  0xa9   : > { %v549_v14 = vadd.f32 %v1563_v59, %v529_v6  ;;  %v501_v15 = vrot.slane %v467_v8, 2  ;;  %v1584_v16 = vmul.f32 %v1530_v24, %v344_v4  ;;  %v423_v21 = vrot.slane %v1577_v12, 1 }
  0xaa   : > { %v563_v18 = vmax.f32 %v1574_v9, 0.0  ;;  %v420_v19 = vsel %vm403_vm0, %v417_v43, %v419_v11  ;;  %v422_v20 = vsel %vm403_vm0, %v419_v11, %v421_v1  ;;  %v299_v22 = vpop.permute.xlu0 %298  ;;  %v561_v25 = vmax.f32 %v1580_v13, 0.0  ;;  %v304_v49 = vpop.permute.xlu1 %303  ;;  %v1349_v13 = vld [vmem:[%s2020_s3 + $0x20] sm:$0xff]  }
  0xab   : > { %v562_v26 = vmax.f32 %v549_v14, 0.0  ;;  %v449_v27 = vadd.f32 %v420_v19, %v367_v46  ;;  %v450_v28 = vadd.f32 %v422_v20, %v368_v7  ;;  %v502_v33 = vsel %vm485_vm1, %v499_v44, %v501_v15 }
  0xac   : > { %v1593_v32 = vrot.slane %v563_v18, 1  ;;  %v504_v34 = vsel %vm485_vm1, %v501_v15, %v503_v10  ;;  %v424_v35 = vsel %vm403_vm0, %v421_v1, %v423_v21  ;;  %v1603_v39 = vmul.f32 %v1534_v29, %v344_v4 }
  0xad   : > { %v1600_v36 = vrot.slane %v562_v26, 1  ;;  %v531_v37 = vadd.f32 %v502_v33, %v449_v27  ;;  %v532_v38 = vadd.f32 %v504_v34, %v450_v28  ;;  %v451_v40 = vadd.f32 %v424_v35, %v369_v58 }
  0xae   : > { %v505_v41 = vrot.slane %v1584_v16, 2  ;;  %v377_v43 = vmul.f32 %v1528_v23, %v294_v17  ;;  %v459_v48 = vmul.f32 %v1530_v24, %v294_v17  ;;  %v1619_v50 = vrot.slane %v561_v25, 1  ;;  %v309_v54 = vpop.permute.xlu0 %308  ;;  %v349_v15 = vpop.permute.xlu1 %348 }
  0xaf   : > { %v595_v44 = vsel %vm403_vm0, %v1600_v36, %v1593_v32  ;;  %v1611_v46 = vadd.f32 %v1563_v59, %v531_v37  ;;  %v1614_v47 = vadd.f32 %v1563_v59, %v532_v38  ;;  %v360_v53 = vmul.f32 %v1534_v29, %v294_v17 }
  0xb0   : > { %v1621_v51 = vmax.f32 %v562_v26, %v595_v44  ;;  %v506_v52 = vsel %vm485_vm1, %v503_v10, %v505_v41  ;;  %v404_v58 = vrot.slane %v377_v43, 1  ;;  %v361_v60 = vmul.f32 %v1534_v29, %v299_v22 }
  0xb1   : > { %v564_v55 = vmax.f32 %v1611_v46, 0.0  ;;  %v565_v56 = vmax.f32 %v1614_v47, 0.0  ;;  %v533_v57 = vadd.f32 %v506_v52, %v451_v40  ;;  %v378_v61 = vmul.f32 %v1528_v23, %v299_v22  ;;  %v1350_v47 = vld [vmem:[%s2020_s3 + $0x28] sm:$0xff]  }
  0xb2   : > { %v460_v62 = vmul.f32 %v1530_v24, %v299_v22  ;;  %v379_v63 = vmul.f32 %v1528_v23, %v304_v49  ;;  %v486_v1 = vrot.slane %v459_v48, 2  ;;  %v362_v2 = vmul.f32 %v1534_v29, %v304_v49  ;;  %v354_v26 = vpop.permute.xlu0 %353 }
  0xb3   : > { %v1634_v0 = vadd.f32 %v1563_v59, %v533_v57  ;;  %v461_v3 = vmul.f32 %v1530_v24, %v304_v49  ;;  %v1640_v4 = vrot.slane %v564_v55, 1  ;;  %v405_v5 = vrot.slane %v378_v61, 1 }
  0xb4   : > { %v487_v6 = vrot.slane %v460_v62, 2  ;;  %v407_v7 = vrot.slane %v379_v63, 1  ;;  %v1644_v8 = vrot.slane %v565_v56, 1  ;;  %v380_v11 = vmul.f32 %v1528_v23, %v309_v54 }
  0xb5   : > { %v489_v10 = vrot.slane %v461_v3, 2  ;;  %v462_v14 = vmul.f32 %v1530_v24, %v309_v54  ;;  %v566_v17 = vmax.f32 %v1634_v0, 0.0  ;;  %v406_v19 = vsel %vm403_vm0, %v404_v58, %v405_v5 }
  0xb6   : > { %v408_v20 = vsel %vm403_vm0, %v405_v5, %v407_v7  ;;  %v363_v22 = vmul.f32 %v1534_v29, %v309_v54  ;;  %v442_v27 = vadd.f32 %v406_v19, %v360_v53  ;;  %v488_v28 = vsel %vm485_vm1, %v486_v1, %v487_v6  ;;  %v1348_v5 = vld [vmem:[%s2020_s3 + $0x18] sm:$0xff]  }
  0xb7   : > { %v443_v33 = vadd.f32 %v408_v20, %v361_v60  ;;  %v490_v34 = vsel %vm485_vm1, %v487_v6, %v489_v10  ;;  %v409_v35 = vrot.slane %v380_v11, 1  ;;  %v491_v37 = vrot.slane %v462_v14, 2  ;;  %1227 = vmatprep.subr.bf16.mxu1 %v1348_v5  ;;  %1206 = vmatprep.subr.bf16.mxu0 %v1348_v5 }
  0xb8   : > { %v388_v38 = vmul.f32 %v1528_v23, %v349_v15  ;;  %v470_v40 = vmul.f32 %v1530_v24, %v349_v15  ;;  %v524_v43 = vadd.f32 %v488_v28, %v442_v27  ;;  %v372_v48 = vmul.f32 %v1534_v29, %v354_v26  ;;  %1233 = vmatpush3.bf16.msra.mxu1 %v1348_v5 }
  0xb9   : > { %v525_v44 = vadd.f32 %v490_v34, %v443_v33  ;;  %v389_v49 = vmul.f32 %v1528_v23, %v354_v26  ;;  %v410_v52 = vsel %vm403_vm0, %v407_v7, %v409_v35  ;;  %v412_v53 = vsel %vm403_vm0, %v409_v35, %v411_v42  ;;  %1207 = vmatpush3.bf16.msra.mxu0 %v1348_v5 }
  0xba   : > { %v492_v54 = vsel %vm485_vm1, %v489_v10, %v491_v37  ;;  %v494_v57 = vsel %vm485_vm1, %v491_v37, %v493_v45  ;;  %v1667_v58 = vadd.f32 %v1563_v59, %v524_v43  ;;  %v444_v61 = vadd.f32 %v410_v52, %v362_v2  ;;  %1228 = vmatprep.subr.bf16.mxu1 %v1349_v13 }
  0xbb   : > { %v1670_v60 = vadd.f32 %v1563_v59, %v525_v44  ;;  %v445_v23 = vadd.f32 %v412_v53, %v363_v22  ;;  %v425_v62 = vrot.slane %v388_v38, 1  ;;  %v507_v63 = vrot.slane %v470_v40, 2  ;;  %1208 = vmatprep.subr.bf16.mxu0 %v1349_v13 }
  0xbc   : > { %v427_v1 = vrot.slane %v389_v49, 1  ;;  %v471_v30 = vmul.f32 %v1530_v24, %v354_v26  ;;  %v1675_v42 = vrot.slane %v566_v17, 1  ;;  %v526_v31 = vadd.f32 %v492_v54, %v444_v61  ;;  %1234 = vmatpush3.bf16.msra.mxu1 %v1349_v13 }
  0xbd   : > { %v527_v3 = vadd.f32 %v494_v57, %v445_v23  ;;  %v371_v45 = vmul.f32 %v1534_v29, %v349_v15  ;;  %v557_v2 = vmax.f32 %v1667_v58, 0.0  ;;  %v426_v6 = vsel %vm403_vm0, %v423_v21, %v425_v62  ;;  %1209 = vmatpush3.bf16.msra.mxu0 %v1349_v13  ;;  %1229 = vmatprep.subr.bf16.mxu1 %v1350_v47 }
  0xbe   : > { %v428_v24 = vsel %vm403_vm0, %v425_v62, %v427_v1  ;;  %v454_v7 = vadd.f32 %v427_v1, %v372_v48  ;;  %v558_v10 = vmax.f32 %v1670_v60, 0.0  ;;  %v1688_v11 = vadd.f32 %v1563_v59, %v526_v31  ;;  %1210 = vmatprep.subr.bf16.mxu0 %v1350_v47 }
  0xbf   : > { %v547_v29 = vadd.f32 %v1563_v59, %v527_v3  ;;  %v508_v14 = vsel %vm485_vm1, %v505_v41, %v507_v63  ;;  %v452_v12 = vadd.f32 %v426_v6, %v1603_v39  ;;  %v453_v15 = vadd.f32 %v428_v24, %v371_v45 }
  0xc0   : > { %v509_v21 = vrot.slane %v471_v30, 2  ;;  %v593_v19 = vsel %vm403_vm0, %v1619_v50, %v1600_v36  ;;  %v559_v20 = vmax.f32 %v1688_v11, 0.0  ;;  %v597_v16 = vsel %vm403_vm0, %v1593_v32, %v1640_v4  ;;  %1235 = vmatpush3.bf16.msra.mxu1 %v1350_v47 }
  0xc1   : > { %v560_v22 = vmax.f32 %v547_v29, 0.0  ;;  %v1704_v41 = vmax.f32 %v561_v25, %v593_v19  ;;  %v534_v39 = vadd.f32 %v508_v14, %v452_v12  ;;  %v1709_v36 = vmax.f32 %v563_v18, %v597_v16  ;;  %1211 = vmatpush3.bf16.msra.mxu0 %v1350_v47 }
  0xc2   : > { %v510_v26 = vsel %vm485_vm1, %v507_v63, %v509_v21  ;;  %v536_v27 = vadd.f32 %v509_v21, %v454_v7  ;;  %v583_v28 = vrot.slane %v557_v2, 1  ;;  %v655_v9 = vrot.slane %v1621_v51, 1 }
  0xc3   : > { %v588_v33 = vrot.slane %v560_v22, 1  ;;  %v535_v34 = vadd.f32 %v510_v26, %v453_v15  ;;  %v653_v35 = vrot.slane %v1704_v41, 1  ;;  %v1718_v25 = vadd.f32 %v1563_v59, %v534_v39 }
  0xc4   : > { %v1721_v32 = vadd.f32 %v1563_v59, %v536_v27  ;;  %v657_v18 = vrot.slane %v1709_v36, 1  ;;  %v599_v40 = vsel %vm403_vm0, %v1640_v4, %v1644_v8  ;;  %v601_v43 = vsel %vm403_vm0, %v1644_v8, %v1675_v42 }
  0xc5   : > { %v591_v37 = vsel %vm403_vm0, %v588_v33, %v1619_v50  ;;  %v1728_v38 = vadd.f32 %v1563_v59, %v535_v34  ;;  %v584_v44 = vrot.slane %v558_v10, 1  ;;  %v586_v48 = vrot.slane %v559_v20, 1 }
  0xc6   : > { %v567_v50 = vmax.f32 %v1718_v25, 0.0  ;;  %v656_v59 = vsel %vm403_vm0, %v653_v35, %v655_v9  ;;  %v658_v49 = vsel %vm403_vm0, %v655_v9, %v657_v18  ;;  %v1748_v8 = vmax.f32 %v564_v55, %v599_v40 }
  0xc7   : > { %v568_v4 = vmax.f32 %v1728_v38, 0.0  ;;  %v1752_v52 = vmax.f32 %v565_v56, %v601_v43  ;;  %v1754_v53 = vmax.f32 %v560_v22, %v591_v37  ;;  %v569_v54 = vmax.f32 %v1721_v32, 0.0 }
  0xc8   : > { %v1285_v57 = vpack.i.bf16 %v658_v49, %v656_v59  ;;  %v713_v61 = vrot.slane %v1704_v41, 2  ;;  %v602_v23 = vrot.slane %v567_v50, 1  ;;  %v659_v62 = vrot.slane %v1748_v8, 1 }
  0xc9   : > { %v661_v63 = vrot.slane %v1752_v52, 1  ;;  %v715_v46 = vrot.slane %v1621_v51, 2  ;;  %v717_v55 = vrot.slane %v1709_v36, 2  ;;  %v719_v56 = vrot.slane %v1748_v8, 2 }
  0xca   : > { %1286 = vrot.lane.b32.xlu1 %v1285_v57, %s1420_s20  ;;  %v721_v1 = vrot.slane %v1752_v52, 2  ;;  %v585_v30 = vsel %vm403_vm0, %v583_v28, %v584_v44  ;;  %v604_v31 = vrot.slane %v568_v4, 1  ;;  %v660_v3 = vsel %vm403_vm0, %v657_v18, %v659_v62 }
  0xcb   : > { %v662_v45 = vsel %vm403_vm0, %v659_v62, %v661_v63  ;;  %v587_v5 = vsel %vm403_vm0, %v584_v44, %v586_v48  ;;  %v716_v24 = vsel %vm485_vm1, %v713_v61, %v715_v46  ;;  %v718_v7 = vsel %vm485_vm1, %v715_v46, %v717_v55 }
  0xcc   : > { %v1290_v6 = vpack.i.bf16 %v662_v45, %v660_v3  ;;  %v720_v29 = vsel %vm485_vm1, %v717_v55, %v719_v56  ;;  %v1295_v14 = vpack.i.bf16 %v718_v7, %v716_v24  ;;  %v722_v12 = vsel %vm485_vm1, %v719_v56, %v721_v1 }
  0xcd   : > { %v589_v15 = vsel %vm403_vm0, %v586_v48, %v588_v33  ;;  %v1785_v21 = vmax.f32 %v557_v2, %v585_v30  ;;  %v1790_v19 = vmax.f32 %v558_v10, %v587_v5  ;;  %v651_v16 = vrot.slane %v1754_v53, 1 }
  0xce   : > { %1291 = vrot.lane.b32.xlu0 %v1290_v6, %s1420_s20  ;;  %v1794_v22 = vmax.f32 %v559_v20, %v589_v15  ;;  %v603_v39 = vsel %vm403_vm0, %v1675_v42, %v602_v23  ;;  %1296 = vrot.lane.b32.xlu1 %v1295_v14, %s1421_s21  ;;  %v605_v60 = vsel %vm403_vm0, %v602_v23, %v604_v31  ;;  %v606_v27 = vrot.slane %v569_v54, 1 }
  0xcf   : > { %v706_v58 = vrot.slane %v1785_v21, 2  ;;  %v646_v2 = vrot.slane %v1785_v21, 1  ;;  %v1805_v10 = vmax.f32 %v566_v17, %v603_v39  ;;  %v707_v11 = vrot.slane %v1790_v19, 2 }
  0xd0   : > { %v709_v20 = vrot.slane %v1794_v22, 2  ;;  %v647_v42 = vrot.slane %v1790_v19, 1  ;;  %v649_v26 = vrot.slane %v1794_v22, 1  ;;  %v1305_v28 = vpack.i.bf16 %v722_v12, %v720_v29 }
  0xd1   : > { %v1813_v33 = vmax.f32 %v567_v50, %v605_v60  ;;  %v663_v34 = vrot.slane %v1805_v10, 1  ;;  %v708_v0 = vsel %vm485_vm1, %v706_v58, %v707_v11  ;;  %v654_v40 = vsel %vm403_vm0, %v651_v16, %v653_v35 }
  0xd2   : > { %v710_v17 = vsel %vm485_vm1, %v707_v11, %v709_v20  ;;  %v648_v13 = vsel %vm403_vm0, %v646_v2, %v647_v42  ;;  %v650_v25 = vsel %vm403_vm0, %v647_v42, %v649_v26  ;;  %1306 = vrot.lane.b32.xlu1 %v1305_v28, %s1421_s21  ;;  %v652_v37 = vsel %vm403_vm0, %v649_v26, %v651_v16 }
  0xd3   : > { %v1315_v9 = vpack.i.bf16 %v710_v17, %v708_v0  ;;  %v1300_v18 = vpack.i.bf16 %v650_v25, %v648_v13  ;;  %v665_v43 = vrot.slane %v1813_v33, 1  ;;  %v711_v44 = vrot.slane %v1754_v53, 2 }
  0xd4   : > { %v607_v48 = vsel %vm403_vm0, %v604_v31, %v606_v27  ;;  %v664_v50 = vsel %vm403_vm0, %v661_v63, %v663_v34  ;;  %v725_v49 = vrot.slane %v1813_v33, 2  ;;  %v1310_v35 = vpack.i.bf16 %v654_v40, %v652_v37 }
  0xd5   : > { %1301 = vrot.lane.b32.xlu0 %v1300_v18, %s1420_s20  ;;  %v666_v59 = vsel %vm403_vm0, %v663_v34, %v665_v43  ;;  %v1834_v57 = vmax.f32 %v568_v4, %v607_v48  ;;  %v712_v62 = vsel %vm485_vm1, %v709_v20, %v711_v44  ;;  %v714_v46 = vsel %vm485_vm1, %v711_v44, %v713_v61 }
  0xd6   : > { %1316 = vrot.lane.b32.xlu1 %v1315_v9, %s1421_s21  ;;  %v1325_v23 = vpack.i.bf16 %v666_v59, %v664_v50  ;;  %v723_v63 = vrot.slane %v1805_v10, 2  ;;  %v633_v4 = vmax.f32 %v569_v54, %v606_v27  ;;  %v1320_v55 = vpack.i.bf16 %v714_v46, %v712_v62 }
  0xd7   : > { %v667_v47 = vrot.slane %v1834_v57, 1  ;;  %v727_v30 = vrot.slane %v1834_v57, 2 }
  0xd8   : > { %v726_v38 = vsel %vm485_vm1, %v723_v63, %v725_v49  ;;  %v724_v56 = vsel %vm485_vm1, %v721_v1, %v723_v63  ;;  %v729_v3 = vrot.slane %v633_v4, 2 }
  0xd9   : > { %1311 = vrot.lane.b32.xlu0 %v1310_v35, %s1420_s20  ;;  %v668_v61 = vsel %vm403_vm0, %v665_v43, %v667_v47  ;;  %v1335_v31 = vpack.i.bf16 %v726_v38, %v724_v56  ;;  %v728_v32 = vsel %vm485_vm1, %v725_v49, %v727_v30 }
  0xda   : > { %1326 = vrot.lane.b32.xlu1 %v1325_v23, %s1420_s20  ;;  %v1330_v45 = vpack.i.bf16 %v667_v47, %v668_v61  ;;  %v730_v54 = vsel %vm485_vm1, %v727_v30, %v729_v3 }
  0xdb   : > { %v1340_v5 = vpack.i.bf16 %v730_v54, %v728_v32 }
  0xdd   : > { %1321 = vrot.lane.b32.xlu0 %v1320_v55, %s1421_s21 }
  0xde   : > { %1336 = vrot.lane.b32.xlu1 %v1335_v31, %s1421_s21 }
  0xe1   : > { %1331 = vrot.lane.b32.xlu0 %v1330_v45, %s1420_s20 }
  0xe5   : > { %1341 = vrot.lane.b32.xlu0 %v1340_v5, %s1421_s21 }
 0x13c   : > { %v1287_v1 = vpop.permute.xlu1 %1286 }
 0x13d   : > { %v1289_v6 = vunpack.i.h.bf16 %v1287_v1  ;;  %v1288_v24 = vunpack.i.l.bf16 %v1287_v1 }
 0x13f   : > { %v772_v39 = vsel %vm767_vm2, %v1704_v41, %v1288_v24  ;;  %v773_v58 = vsel %vm767_vm2, %v1621_v51, %v1289_v6 }
 0x140   : > { %v1292_v7 = vpop.permute.xlu0 %1291  ;;  %v1297_v29 = vpop.permute.xlu1 %1296 }
 0x141   : > { %v1299_v14 = vunpack.i.h.bf16 %v1297_v29  ;;  %v1298_v12 = vunpack.i.l.bf16 %v1297_v29  ;;  %v1294_v15 = vunpack.i.h.bf16 %v1292_v7  ;;  %v1293_v16 = vunpack.i.l.bf16 %v1292_v7  ;;  %v1166_v29 = vld [vmem:[%s2021_s4] ss:$0 sm:$0xff] }
 0x143   : > { %v785_v2 = vsel %vm780_vm3, %v772_v39, %v1298_v12  ;;  %v786_v60 = vsel %vm780_vm3, %v773_v58, %v1299_v14  ;;  %v775_v27 = vsel %vm767_vm2, %v1748_v8, %v1294_v15  ;;  %v774_v28 = vsel %vm767_vm2, %v1709_v36, %v1293_v16 }
 0x144   : > { %v1307_v11 = vpop.permute.xlu1 %1306  ;;  %v795_v20 = vpack.c.bf16 %v786_v60, %v785_v2 }
 0x145   : > { %v1309_v42 = vunpack.i.h.bf16 %v1307_v11  ;;  %v1308_v26 = vunpack.i.l.bf16 %v1307_v11 }
 0x146   : > { %1216 = vmatprep.mubr.msk.bf16.mxu1 %vm854_vm4, %v795_v20 }
 0x147   : > { %v1302_v41 = vpop.permute.xlu0 %1301  ;;  %v788_v51 = vsel %vm780_vm3, %v775_v27, %v1309_v42  ;;  %v787_v34 = vsel %vm780_vm3, %v774_v28, %v1308_v26 }
 0x148   : > { %v1304_v0 = vunpack.i.h.bf16 %v1302_v41  ;;  %v1303_v17 = vunpack.i.l.bf16 %v1302_v41  ;;  %v796_v13 = vpack.c.bf16 %v788_v51, %v787_v34  ;;  %v1317_v25 = vpop.permute.xlu1 %1316 }
 0x149   : > { %v1319_v9 = vunpack.i.h.bf16 %v1317_v25  ;;  %v1318_v18 = vunpack.i.l.bf16 %v1317_v25 }
 0x14a   : > { %v768_v37 = vsel %vm767_vm2, %v1785_v21, %v1303_v17  ;;  %v769_v8 = vsel %vm767_vm2, %v1790_v19, %v1304_v0  ;;  %1217 = vmatmul.mubr.msk.bf16.vlgmr.msra.gmra.mrb[0].mxu1 %vm854_vm4, %v796_v13 }
 0x14b   : > { %v1312_v36 = vpop.permute.xlu0 %1311  ;;  %v781_v40 = vsel %vm780_vm3, %v768_v37, %v1318_v18  ;;  %v782_v43 = vsel %vm780_vm3, %v769_v8, %v1319_v9 }
 0x14c   : > { %v1314_v44 = vunpack.i.h.bf16 %v1312_v36  ;;  %v1313_v48 = vunpack.i.l.bf16 %v1312_v36  ;;  %v1327_v50 = vpop.permute.xlu1 %1326  ;;  %v793_v59 = vpack.c.bf16 %v782_v43, %v781_v40 }
 0x14d   : > { %v1329_v49 = vunpack.i.h.bf16 %v1327_v50  ;;  %v1328_v35 = vunpack.i.l.bf16 %v1327_v50 }
 0x14e   : > { %1212 = vmatprep.mubr.msk.bf16.mxu0 %vm854_vm4, %v793_v59  ;;  %v771_v19 = vsel %vm767_vm2, %v1754_v53, %v1314_v44  ;;  %v770_v46 = vsel %vm767_vm2, %v1794_v22, %v1313_v48 }
 0x14f   : > { %v1322_v23 = vpop.permute.xlu0 %1321  ;;  %v777_v56 = vsel %vm767_vm2, %v1805_v10, %v1329_v49  ;;  %v776_v61 = vsel %vm767_vm2, %v1752_v52, %v1328_v35 }
 0x150   : > { %v1324_v21 = vunpack.i.h.bf16 %v1322_v23  ;;  %v1323_v62 = vunpack.i.l.bf16 %v1322_v23  ;;  %v1337_v63 = vpop.permute.xlu1 %1336  ;;  %v1181_v23 = vld [vmem:[%s2022_s5 + $0x40] sm:$0xff] }
 0x151   : > { %v1339_v4 = vunpack.i.h.bf16 %v1337_v63  ;;  %v1338_v55 = vunpack.i.l.bf16 %v1337_v63 }
 0x152   : > { %v783_v47 = vsel %vm780_vm3, %v770_v46, %v1323_v62  ;;  %v784_v38 = vsel %vm780_vm3, %v771_v19, %v1324_v21  ;;  %v1010_v21 = vld [vmem:[%s2022_s5 + $0x10] sm:$0xff] }
 0x153   : > { %v794_v30 = vpack.c.bf16 %v784_v38, %v783_v47  ;;  %v1332_v31 = vpop.permute.xlu0 %1331  ;;  %v789_v53 = vsel %vm780_vm3, %v776_v61, %v1338_v55  ;;  %v790_v3 = vsel %vm780_vm3, %v777_v56, %v1339_v4  ;;  %v1179_v47 = vld [vmem:[%s2022_s5 + $0x30] sm:$0xff]  ;;  %v1180_v38 = vld [vmem:[%s2022_s5 + $0x38] sm:$0xff]  ;;  %v1009_v61 = vld [vmem:[%s2022_s5 + $0x8] sm:$0xff] }
 0x154   : > { %v797_v22 = vpack.c.bf16 %v790_v3, %v789_v53  ;;  %v1334_v45 = vunpack.i.h.bf16 %v1332_v31  ;;  %v1333_v32 = vunpack.i.l.bf16 %v1332_v31  ;;  %v1008_v3 = vld [vmem:[%s2022_s5] sm:$0xff] }
 0x155   : > { %1213 = vmatmul.mubr.msk.bf16.vlgmr.msra.gmra.mrb[0].mxu0 %vm854_vm4, %v794_v30 }
 0x156   : > { %1220 = vmatprep.mubr.msk.bf16.mxu1 %vm854_vm4, %v797_v22  ;;  %v779_v10 = vsel %vm767_vm2, %v1834_v57, %v1334_v45  ;;  %v778_v52 = vsel %vm767_vm2, %v1813_v33, %v1333_v32  ;;  %v1182_v32 = vld [vmem:[%s2022_s5 + $0x48] sm:$0xff] }
 0x157   : > { %v1342_v54 = vpop.permute.xlu0 %1341 }
 0x158   : > { %v1344_v5 = vunpack.i.h.bf16 %v1342_v54  ;;  %v1343_v1 = vunpack.i.l.bf16 %v1342_v54 }
 0x15a   : > { %v791_v6 = vsel %vm780_vm3, %v778_v52, %v1343_v1  ;;  %v792_v24 = vsel %vm780_vm3, %v779_v10, %v1344_v5  ;;  %v1011_v1 = vld [vmem:[%s2022_s5 + $0x18] sm:$0xff] }
 0x15b   : > { %v798_v7 = vpack.c.bf16 %v792_v24, %v791_v6 }
 0x15d   : > { %1221 = vmatmul.mubr.msk.bf16.gmra.mrb[4].mxu1 %vm854_vm4, %v798_v7 }
 0x21d   : > { %v1218_v14 = vpop.f32.mrb[0].mxu1 }
 0x21e   : > { %v932_v12 = vadd.f32 %v1218_v14, %v1166_v29  ;;  %v923_v15 = vpop.f32.mrb[1].mxu1 }
 0x21f   : > { %v924_v16 = vadd.f32 %v1166_v29, %v923_v15  ;;  %v1219_v39 = vpop.f32.mrb[2].mxu1 }
 0x220   : > { %v960_v57 = vmax.f32 %v932_v12, 0.0  ;;  %v935_v58 = vadd.f32 %v1219_v39, %v1166_v29  ;;  %v926_v2 = vpop.f32.mrb[3].mxu1  ;;  %v1183_v39 = vld [vmem:[%s2022_s5 + $0x50] sm:$0xff] }
 0x221   : > { %v958_v33 = vmax.f32 %v924_v16, 0.0  ;;  %v927_v60 = vadd.f32 %v1166_v29, %v926_v2 }
 0x222   : > { %972 = vst.msk [vmem:[#allocation2 + $0x30] sm:$0xff] %vm780_vm3, %v960_v57  ;;  %v961_v11 = vmax.f32 %v935_v58, 0.0  ;;  %v1184_v57 = vld [vmem:[%s2022_s5 + $0x58] sm:$0x7f] }
 0x223   : > { %970 = vst.msk [vmem:[#allocation2 + $0x20] sm:$0xff] %vm780_vm3, %v958_v33  ;;  %v959_v20 = vmax.f32 %v927_v60, 0.0  ;;  %v1012_v33 = vld [vmem:[%s2022_s5 + $0x20] sm:$0xff] }
 0x224   : > { %973 = vst.msk [vmem:[#allocation2 + $0x38] sm:$0xff] %vm780_vm3, %v961_v11 }
 0x225   : > { %971 = vst.msk [vmem:[#allocation2 + $0x28] sm:$0xff] %vm780_vm3, %v959_v20 }
 0x228   : > { %v1214_v42 = vpop.f32.mrb[0].mxu0 }
 0x229   : > { %v916_v26 = vadd.f32 %v1214_v42, %v1166_v29  ;;  %v907_v27 = vpop.f32.mrb[1].mxu0 }
 0x22a   : > { %v908_v28 = vadd.f32 %v1166_v29, %v907_v27  ;;  %v1215_v41 = vpop.f32.mrb[2].mxu0 }
 0x22b   : > { %v956_v51 = vmax.f32 %v916_v26, 0.0  ;;  %v919_v34 = vadd.f32 %v1215_v41, %v1166_v29  ;;  %v910_v0 = vpop.f32.mrb[3].mxu0  ;;  %v985_v19 = vld [vmem:[#allocation2 + $0x30] ss:$2 sm:$0xff]  ;;  %v997_v46 = vld [vmem:[#allocation2 + $0x31] ss:$2 sm:$0xff] }
 0x22c   : > { %v954_v17 = vmax.f32 %v908_v28, 0.0  ;;  %v911_v13 = vadd.f32 %v1166_v29, %v910_v0  ;;  %v983_v43 = vld [vmem:[#allocation2 + $0x20] ss:$2 sm:$0xff]  ;;  %v995_v44 = vld [vmem:[#allocation2 + $0x21] ss:$2 sm:$0xff]  ;;  %v1005_v45 = vmax.f32 %v985_v19, %v997_v46 }
 0x22d   : > { %968 = vst.msk [vmem:[#allocation2 + $0x10] sm:$0xff] %vm780_vm3, %v956_v51  ;;  %v957_v25 = vmax.f32 %v919_v34, 0.0  ;;  %v1004_v63 = vmax.f32 %v983_v43, %v995_v44  ;;  %v1013_v51 = vld [vmem:[%s2022_s5 + $0x28] sm:$0x7f] }
 0x22e   : > { %966 = vst.msk [vmem:[#allocation2] sm:$0xff] %vm780_vm3, %v954_v17  ;;  %v955_v9 = vmax.f32 %v911_v13, 0.0  ;;  %v1051_v14 = vmul.f32 %v1182_v32, %v1005_v45  ;;  %v1017_v15 = vmul.f32 %v1011_v1, %v1005_v45 }
 0x22f   : > { %969 = vst.msk [vmem:[#allocation2 + $0x18] sm:$0xff] %vm780_vm3, %v957_v25  ;;  %v1050_v5 = vmul.f32 %v1181_v23, %v1004_v63  ;;  %v1016_v52 = vmul.f32 %v1010_v21, %v1004_v63 }
 0x230   : > { %967 = vst.msk [vmem:[#allocation2 + $0x8] sm:$0xff] %vm780_vm3, %v955_v9  ;;  %v1222_v18 = vpop.f32.mrb[4].mxu1  ;;  %v1059_v17 = vsel %vm780_vm3, %v1051_v14, 0.0  ;;  %v1025_v13 = vsel %vm780_vm3, %v1017_v15, 0.0 }
 0x231   : > { %v948_v37 = vadd.f32 %v1222_v18, %v1166_v29  ;;  %v939_v8 = vpop.f32.mrb[5].mxu1  ;;  %v1057_v2 = vsel %vm780_vm3, %v1050_v5, 0.0  ;;  %v1023_v11 = vsel %vm780_vm3, %v1016_v52, 0.0 }
 0x232   : > { %v940_v36 = vadd.f32 %v1166_v29, %v939_v8  ;;  %v1223_v40 = vpop.f32.mrb[6].mxu1 }
 0x233   : > { %v964_v48 = vmax.f32 %v948_v37, 0.0  ;;  %v951_v50 = vadd.f32 %v1223_v40, %v1166_v29  ;;  %v942_v59 = vpop.f32.mrb[7].mxu1 }
 0x234   : > { %v962_v49 = vmax.f32 %v940_v36, 0.0  ;;  %v943_v35 = vadd.f32 %v1166_v29, %v942_v59 }
 0x235   : > { %976 = vst.msk [vmem:[#allocation2 + $0x50] sm:$0xff] %vm780_vm3, %v964_v48  ;;  %v965_v62 = vmax.f32 %v951_v50, 0.0 }
 0x236   : > { %974 = vst.msk [vmem:[#allocation2 + $0x40] sm:$0xff] %vm780_vm3, %v962_v49  ;;  %v963_v4 = vmax.f32 %v943_v35, 0.0  ;;  %v981_v55 = vld [vmem:[#allocation2 + $0x10] ss:$2 sm:$0xff]  ;;  %v993_v56 = vld [vmem:[#allocation2 + $0x11] ss:$2 sm:$0xff] }
 0x237   : > { %978 = vst.msk [vmem:[#allocation2 + $0x58] sm:$0x7f] %vm977_vm5, %v965_v62  ;;  %v979_v30 = vld [vmem:[#allocation2] ss:$2 sm:$0xff]  ;;  %v991_v31 = vld [vmem:[#allocation2 + $0x1] ss:$2 sm:$0xff]  ;;  %v1003_v53 = vmax.f32 %v981_v55, %v993_v56 }
 0x238   : > { %975 = vst.msk [vmem:[#allocation2 + $0x48] sm:$0xff] %vm780_vm3, %v963_v4  ;;  %v1002_v22 = vmax.f32 %v979_v30, %v991_v31 }
 0x239   : > { %v1049_v54 = vmul.f32 %v1180_v38, %v1003_v53  ;;  %v1015_v10 = vmul.f32 %v1009_v61, %v1003_v53 }
 0x23a   : > { %v1048_v6 = vmul.f32 %v1179_v47, %v1002_v22  ;;  %v1014_v24 = vmul.f32 %v1008_v3, %v1002_v22  ;;  %v1077_v3 = vld [vmem:[%s2023_s6] sm:$0x1] }
 0x23b   : > { %v1055_v7 = vsel %vm780_vm3, %v1049_v54, 0.0  ;;  %v1021_v29 = vsel %vm780_vm3, %v1015_v10, 0.0 }
 0x23c   : > { %v1054_v12 = vsel %vm780_vm3, %v1048_v6, 0.0  ;;  %v1020_v16 = vsel %vm780_vm3, %v1014_v24, 0.0 }
 0x23d   : > { %v1056_v58 = vadd.f32 %v1055_v7, %v1054_v12  ;;  %v1022_v60 = vadd.f32 %v1021_v29, %v1020_v16 }
 0x23e   : > { %v989_v20 = vld [vmem:[#allocation2 + $0x50] ss:$2 sm:$0x7f]  ;;  %v1001_v42 = vld [vmem:[#allocation2 + $0x51] ss:$2 sm:$0x7f] }
 0x23f   : > { %v987_v26 = vld [vmem:[#allocation2 + $0x40] ss:$2 sm:$0xff]  ;;  %v999_v27 = vld [vmem:[#allocation2 + $0x41] ss:$2 sm:$0xff]  ;;  %v1007_v28 = vmax.f32 %v989_v20, %v1001_v42  ;;  %v1058_v41 = vadd.f32 %v1057_v2, %v1056_v58  ;;  %v1024_v34 = vadd.f32 %v1023_v11, %v1022_v60 }
 0x240   : > { %v1006_v0 = vmax.f32 %v987_v26, %v999_v27 }
 0x241   : > { %v1053_v9 = vmul.f32 %v1184_v57, %v1007_v28  ;;  %v1019_v37 = vmul.f32 %v1013_v51, %v1007_v28  ;;  %v1060_v8 = vadd.f32 %v1059_v17, %v1058_v41  ;;  %v1026_v36 = vadd.f32 %v1025_v13, %v1024_v34 }
 0x242   : > { %v1052_v25 = vmul.f32 %v1183_v39, %v1006_v0  ;;  %v1018_v18 = vmul.f32 %v1012_v33, %v1006_v0 }
 0x243   : > { %v1063_v50 = vsel %vm977_vm5, %v1053_v9, 0.0  ;;  %v1029_v59 = vsel %vm977_vm5, %v1019_v37, 0.0 }
 0x244   : > { %v1061_v40 = vsel %vm780_vm3, %v1052_v25, 0.0  ;;  %v1027_v43 = vsel %vm780_vm3, %v1018_v18, 0.0 }
 0x245   : > { %v1062_v44 = vadd.f32 %v1061_v40, %v1060_v8  ;;  %v1028_v48 = vadd.f32 %v1027_v43, %v1026_v36 }
 0x247   : > { %v1064_v49 = vadd.f32 %v1063_v50, %v1062_v44  ;;  %v1030_v35 = vadd.f32 %v1029_v59, %v1028_v48 }
 0x249   : > { %1065 = vadd.xlane.f32.xlu0 %v1064_v49  ;;  %1031 = vadd.xlane.f32.xlu1 %v1030_v35 }
 0x2d6   : > { %v1066_v23 = vpop.xlane.xlu0 %1065  ;;  %v1032_v21 = vpop.xlane.xlu1 %1031 }
 0x2d7   : > { %v1067_v62 = vrot.slane %v1066_v23, 4  ;;  %v1033_v19 = vrot.slane %v1032_v21, 4 }
 0x2d9   : > { %v1068_v46 = vadd.f32 %v1067_v62, %v1066_v23  ;;  %v1034_v63 = vadd.f32 %v1033_v19, %v1032_v21 }
 0x2db   : > { %v1069_v47 = vrot.slane %v1068_v46, 2  ;;  %v1035_v38 = vrot.slane %v1034_v63, 2 }
 0x2dd   : > { %v1036_v4 = vadd.f32 %v1035_v38, %v1034_v63  ;;  %v1070_v55 = vadd.f32 %v1069_v47, %v1068_v46 }
 0x2df   : > { %v1037_v56 = vrot.slane %v1036_v4, 1  ;;  %v1071_v61 = vrot.slane %v1070_v55, 1 }
 0x2e1   : > { %v1038_v30 = vadd.f32 %v1037_v56, %v1036_v4  ;;  %v1072_v31 = vadd.f32 %v1071_v61, %v1070_v55 }
 0x2e3   : > { %1237 = vpush %v1038_v30 }
 0x2e4   : > { %1239 = vpush %v1072_v31 }
 0x314   : > { %s1238_s20 = spop %1237 }
 0x315   : > { %v1040_v53 = vstv %s1238_s20  ;;  %s1240_s21 = spop %1239  ;;  %s1361_s20 = scalar_lea.vmem %s1360_s19, 32 }
 0x316   : > { %v1074_v22 = vstv %s1240_s21  ;;  %p1363_p1 = scmp.lt.s32.totalorder %s1361_s20, %s1355_s18 }
 0x317   : > { %v1076_v45 = vsel %vm1075_vm6, %v1040_v53, %v1074_v22 }
 0x318   : > { %v1078_v32 = vadd.f32 %v1077_v3, %v1076_v45  ;;  %p1364_p2 = por %p1363_p1, %p1362_p0 }
 0x31a   : > { %v1080_v54 = vsel %vm1079_vm7, %v1078_v32, -inf  ;;  %p1365_p3 = pnand %p1364_p2, %p1358_p13 }
 0x31b   : > { %1081 = vmax.xlane.f32.xlu0 %v1080_v54 }
 0x3a8   : > { %v1082_v5 = vpop.xlane.xlu0 %1081 }
 0x3a9   : > { %v1083_v1 = vsub.f32 %v1078_v32, %v1082_v5 }
 0x3ab   : > { %v1084_v10 = vmul.f32 1.442695, %v1083_v1 }
 0x3ad   : > { %1351 = vpow2.f32 %v1084_v10 }
 0x3b7   : > { %v1352_v52 = vpop.eup %1351 }
 0x3b8   : > { %v1086_v6 = vsel %vm1079_vm7, %v1352_v52, 0.0 }
 0x3b9   : > { %1087 = vadd.xlane.f32.xlu1 %v1086_v6 }
 0x446   : > { %v1088_v24 = vpop.xlane.xlu1 %1087 }
 0x447   : > { %1353 = vrcp.f32 %v1088_v24 }
 0x451   : > { %v1354_v7 = vpop.eup %1353 }
 0x452   : > { %v1090_v29 = vmul.f32 %v1354_v7, %v1352_v52 }
 0x454   : > { %1091 = vst.msk [vmem:[%s270_s9] sm:$0x1] %vm1079_vm7, %v1090_v29 }
 0x455   : > { %1368 = shalt.err (!%p1365_p3)
}
 0x456   : > { %s1369_s21 = scalar_lea.hbm %s1974_s16, 16  ;;  %s1373_s29 = scalar_lea.hbm %s2024_s7, 32 }
 0x457   : > { %p1370_p4 = scmp.ne.s32.totalorder %s1974_s16, %s1369_s21  ;;  %p1374_p9 = scmp.lt.u32.totalorder %s1974_s16, %s2024_s7 }
 0x458   : > { %p1375_p10 = scmp.lt.u32.totalorder %s1373_s29, %s1369_s21  ;;  %p1377_p12 = scmp.lt.u32.totalorder %s1369_s21, %s1974_s16 }
 0x459   : > { %p1371_p7 = pnand %p1370_p4, %p1501_p5 }
 0x45a   : > { %p1376_p11 = por %p1375_p10, %p1374_p9 }
 0x45b   : > { %p1372_p8 = pneg %p1371_p7 }
 0x45c   : > { %p1378_p13 = por %p1377_p12, %p1376_p11 }
 0x45e   : > { %p1379_p0 = pnand %p1378_p13, %p1372_p8 }
 0x460   : > { %1382 = shalt.err (!%p1379_p0)
}
 0x461   : > { %1241 = dma.vmem_to_hbm [thread:$0]  (%p1501_p5), %s1976_s13, 16, %s1974_s16, %s1093_s17  }
 0x462 PF: > { %p1247_p1 = scmp.ge.s32.totalorder %s1417_s27, 2  ;;  %s1117_s14 = sand.u32 1, %s1405_s24  }
 0x463   : > { %s1118_s15 = scalar_lea.sflag [#allocation4], %s1117_s14 }
 0x464   : > { %p1244_p2 = pnand %p1247_p1, %p1505_p6 }
 0x466   : > { %1400 = dma.done.wait (!%p1244_p2), %s1118_s15, 16  }
 0x467   : > { %1402 = vsyncadd (!%p1244_p2), %s1118_s15, 4294967280  ;;  %p17_p3 = scmp.ge.s32.totalorder %s1488_s30, 4   ;;  %s2027_s24 = smov %s1409_s25 }
 0x468   : > { %s2028_s25 = smov %s1413_s26  ;;  %s2029_s26 = smov %s1499_s10 }
 0x469   : > { %s2030_s27 = smov %s1488_s30  ;;  %19 = sbr.rel (!%p17_p3) target bundleno = 3 (0x3), region = 95 }
 0x470   :  { %1122 = vsyncpa [#allocation4], 1 }
 0x471   :  { %1124 = vsyncpa [#allocation4 + $0x1], 1 }

</bundles_post_ra>
